<compile_context>
chip_gen: v6e
topology: v6e:2x2x1
jax: 0.10.0
libtpu: 0.0.40
codegen_flags: <defaults>
</compile_context>

<pallas_src>
import functools

import jax
import jax.numpy as jnp
from jax.experimental import pallas as pl
from jax.experimental.pallas import tpu as pltpu


def fcblock_kernel(x_ref, w_ref, b_ref, gamma_ref, beta_ref, o_ref):
    """One (N-tile, K-tile) grid step of Linear -> BatchNorm1d -> ReLU.

    The output block index is k-invariant, so o_ref stays resident in VMEM
    across the whole K sweep and doubles as the f32 accumulator (P3 pattern).
    """
    k = pl.program_id(1)

    # ---- init resident accumulator at the first K step ----
    @pl.when(k == 0)
    def _():
        o_ref[...] = jnp.zeros_like(o_ref)

    # ---- Linear partial product: out += x_k @ W_kj  (MXU, f32 accumulation) ----
    o_ref[...] += jnp.dot(x_ref[...], w_ref[...],
                          preferred_element_type=jnp.float32)

    # ---- epilogue only on the last K step: bias + BN(train) + ReLU ----
    @pl.when(k == pl.num_programs(1) - 1)
    def _():
        y = o_ref[...] + b_ref[...]                          # (B, TN) f32
        inv_b = 1.0 / y.shape[0]                             # static batch size
        # Fused single-sweep reductions over the batch (sublane) axis.
        s1 = jnp.sum(y, axis=0, keepdims=True)               # (1, TN)
        s2 = jnp.sum(y * y, axis=0, keepdims=True)           # (1, TN)
        mean = s1 * inv_b
        var = s2 * inv_b - mean * mean                       # biased (train-mode)
        # Fold gamma/beta into one scale/shift pair -> single FMA per element.
        scale = gamma_ref[...] * jax.lax.rsqrt(var + 1e-5)   # EUP rsqrt
        shift = beta_ref[...] - mean * scale
        o_ref[...] = jnp.maximum(y * scale + shift, 0.0).astype(o_ref.dtype)


def _round_up(x, m):
    return ((x + m - 1) // m) * m


@functools.partial(jax.jit, static_argnames=("tn", "tk"))
def fc_block(x, w, b, gamma, beta, *, tn=256, tk=512):
    """Fused FCBlock forward.

    x: (B, in_size) f32, w: (in_size, out_size) f32, b/gamma/beta: (1, out_size).
    Returns (B, out_size) f32.
    """
    B, in_size = x.shape
    out_size = w.shape[1]

    # Effective tile sizes: use the full dim when it is small (block == full
    # array dim keeps the (8,128) rule happy with no padding); otherwise pad
    # up to a tile multiple so every block is lane/sublane aligned.
    if out_size <= tn:
        tn_eff, n_pad = out_size, out_size
    else:
        tn_eff, n_pad = tn, _round_up(out_size, tn)
    if in_size <= tk:
        tk_eff, k_pad = in_size, in_size
    else:
        tk_eff, k_pad = tk, _round_up(in_size, tk)

    # Zero padding is exact: padded K contributes 0 to the matmul, and padded
    # N features are independent columns that get sliced off at the end.
    if k_pad != in_size:
        x = jnp.pad(x, ((0, 0), (0, k_pad - in_size)))
        w = jnp.pad(w, ((0, k_pad - in_size), (0, 0)))
    if n_pad != out_size:
        w = jnp.pad(w, ((0, 0), (0, n_pad - out_size)))
        b = jnp.pad(b, ((0, 0), (0, n_pad - out_size)))
        gamma = jnp.pad(gamma, ((0, 0), (0, n_pad - out_size)))
        # gamma=0 in the padded columns keeps var=0 features finite (scale=0).
        beta = jnp.pad(beta, ((0, 0), (0, n_pad - out_size)))

    n_tiles = n_pad // tn_eff
    k_tiles = k_pad // tk_eff

    # Explicit scoped-VMEM budget: double-buffered in/out blocks + headroom.
    blk_bytes = (B * tk_eff + tk_eff * tn_eff + 3 * tn_eff + B * tn_eff) * 4
    vmem_limit = min(max(2 * blk_bytes + (8 << 20), 16 << 20), 48 << 20)

    out = pl.pallas_call(
        fcblock_kernel,
        out_shape=jax.ShapeDtypeStruct((B, n_pad), jnp.float32),
        grid_spec=pltpu.PrefetchScalarGridSpec(
            num_scalar_prefetch=0,
            grid=(n_tiles, k_tiles),                       # reduction axis last
            in_specs=[
                pl.BlockSpec((B, tk_eff), lambda j, k: (0, k)),        # x
                pl.BlockSpec((tk_eff, tn_eff), lambda j, k: (k, j)),   # W
                pl.BlockSpec((1, tn_eff), lambda j, k: (0, j)),        # bias
                pl.BlockSpec((1, tn_eff), lambda j, k: (0, j)),        # gamma
                pl.BlockSpec((1, tn_eff), lambda j, k: (0, j)),        # beta
            ],
            out_specs=pl.BlockSpec((B, tn_eff), lambda j, k: (0, j)),
        ),
        compiler_params=pltpu.CompilerParams(
            dimension_semantics=("parallel", "arbitrary"),
            vmem_limit_bytes=vmem_limit,
        ),
    )(x, w, b, gamma, beta)

    if n_pad != out_size:
        out = out[:, :out_size]
    return out


def init_params(key, in_size, out_size):
    """Deterministic parameter init matching nn.Linear / nn.BatchNorm1d shapes."""
    k_w, k_b = jax.random.split(key)
    bound = 1.0 / jnp.sqrt(in_size)
    # PyTorch stores Linear weight as (out, in); we keep the transposed layout.
    w = jax.random.uniform(k_w, (in_size, out_size), jnp.float32, -bound, bound)
    b = jax.random.uniform(k_b, (1, out_size), jnp.float32, -bound, bound)
    gamma = jnp.ones((1, out_size), jnp.float32)    # BatchNorm1d.weight init
    beta = jnp.zeros((1, out_size), jnp.float32)    # BatchNorm1d.bias init
    return w, b, gamma, beta


def fc_block_ref(x, w, b, gamma, beta):
    """Pure-JAX reference (Linear -> train-mode BatchNorm1d -> ReLU)."""
    y = x @ w + b
    mean = jnp.mean(y, axis=0, keepdims=True)
    var = jnp.mean((y - mean) ** 2, axis=0, keepdims=True)
    z = (y - mean) / jnp.sqrt(var + 1e-5) * gamma + beta
    return jnp.maximum(z, 0.0)


if __name__ == "__main__":
    key = jax.random.PRNGKey(0)

    # --- small shape consistent with the module (single-tile path) ---
    B, in_size, out_size = 8, 32, 64
    k_x, k_p, key = jax.random.split(key, 3)
    x = jax.random.normal(k_x, (B, in_size), jnp.float32)
    w, b, gamma, beta = init_params(k_p, in_size, out_size)

    out = jax.block_until_ready(fc_block(x, w, b, gamma, beta))
    ref = fc_block_ref(x, w, b, gamma, beta)
    assert out.shape == (B, out_size)
    assert jnp.allclose(out, ref, atol=1e-4, rtol=1e-4), "mismatch vs reference (small)"

    # --- larger shape exercising N/K tiling, padding and the resident accumulator ---
    B2, in2, out2 = 16, 640, 384
    k_x2, k_p2, key = jax.random.split(key, 3)
    x2 = jax.random.normal(k_x2, (B2, in2), jnp.float32)
    w2, b2, g2, be2 = init_params(k_p2, in2, out2)

    out2_v = jax.block_until_ready(fc_block(x2, w2, b2, g2, be2))
    ref2 = fc_block_ref(x2, w2, b2, g2, be2)
    assert out2_v.shape == (B2, out2)
    assert jnp.allclose(out2_v, ref2, atol=1e-4, rtol=1e-4), "mismatch vs reference (tiled)"

    print("KERNEL_OK")
</pallas_src>

<mosaic_0001>
module attributes {stable_mosaic.version = 11 : i64} {
  func.func @fcblock_kernel(%arg0: i32, %arg1: i32, %arg2: memref<8x32xf32, #tpu.memory_space<vmem>>, %arg3: memref<32x64xf32, #tpu.memory_space<vmem>>, %arg4: memref<1x64xf32, #tpu.memory_space<vmem>>, %arg5: memref<1x64xf32, #tpu.memory_space<vmem>>, %arg6: memref<1x64xf32, #tpu.memory_space<vmem>>, %arg7: memref<8x64xf32, #tpu.memory_space<vmem>>) attributes {dimension_semantics = [#tpu.dimension_semantics<parallel>, #tpu.dimension_semantics<arbitrary>], iteration_bounds = array<i64: 1, 1>, scalar_prefetch = 0 : i64, scratch_operands = 0 : i64, tpu.core_type = #tpu.core_type<tc>, window_params = [{transform_indices = @transform_0, window_bounds = array<i64: 8, 32>}, {transform_indices = @transform_1, window_bounds = array<i64: 32, 64>}, {transform_indices = @transform_2, window_bounds = array<i64: 1, 64>}, {transform_indices = @transform_3, window_bounds = array<i64: 1, 64>}, {transform_indices = @transform_4, window_bounds = array<i64: 1, 64>}, {transform_indices = @transform_5, window_bounds = array<i64: 8, 64>}]} {
    %c0_i32 = arith.constant 0 : i32
    %0 = arith.cmpi eq, %arg1, %c0_i32 : i32
    %1 = arith.extui %0 : i1 to i32
    %c0_i32_0 = arith.constant 0 : i32
    %2 = arith.cmpi ne, %1, %c0_i32_0 : i32
    scf.if %2 {
      %cst_10 = arith.constant 0.000000e+00 : f32
      %12 = vector.broadcast %cst_10 : f32 to vector<8x64xf32>
      %c0_11 = arith.constant 0 : index
      %c0_12 = arith.constant 0 : index
      %13 = vector.load %arg7[%c0_11, %c0_12] : memref<8x64xf32, #tpu.memory_space<vmem>>, vector<8x64xf32>
      tpu.vector_store %arg7[%c0_11, %c0_12], %12 {strides = array<i32>} : memref<8x64xf32, #tpu.memory_space<vmem>>, vector<8x64xf32>,
    } else {
    }
    %c0 = arith.constant 0 : index
    %c0_1 = arith.constant 0 : index
    %3 = vector.load %arg7[%c0, %c0_1] : memref<8x64xf32, #tpu.memory_space<vmem>>, vector<8x64xf32>
    %c0_2 = arith.constant 0 : index
    %c0_3 = arith.constant 0 : index
    %4 = vector.load %arg2[%c0_2, %c0_3] : memref<8x32xf32, #tpu.memory_space<vmem>>, vector<8x32xf32>
    %c0_4 = arith.constant 0 : index
    %c0_5 = arith.constant 0 : index
    %5 = vector.load %arg3[%c0_4, %c0_5] : memref<32x64xf32, #tpu.memory_space<vmem>>, vector<32x64xf32>
    %cst = arith.constant dense<0.000000e+00> : vector<8x64xf32>
    %6 = tpu.matmul %4, %5, %cst {dimension_numbers = #tpu.dot_dimension_numbers<[1], [0], [0], [1], [0, 0, 1, 1], [], []>} : vector<8x32xf32>, vector<32x64xf32>, vector<8x64xf32> -> vector<8x64xf32>
    %7 = arith.addf %3, %6 : vector<8x64xf32>
    %c0_6 = arith.constant 0 : index
    %c0_7 = arith.constant 0 : index
    %8 = vector.load %arg7[%c0_6, %c0_7] : memref<8x64xf32, #tpu.memory_space<vmem>>, vector<8x64xf32>
    tpu.vector_store %arg7[%c0_6, %c0_7], %7 {strides = array<i32>} : memref<8x64xf32, #tpu.memory_space<vmem>>, vector<8x64xf32>,
    %c0_i32_8 = arith.constant 0 : i32
    %9 = arith.cmpi eq, %arg1, %c0_i32_8 : i32
    %10 = arith.extui %9 : i1 to i32
    %c0_i32_9 = arith.constant 0 : i32
    %11 = arith.cmpi ne, %10, %c0_i32_9 : i32
    scf.if %11 {
      %c0_10 = arith.constant 0 : index
      %c0_11 = arith.constant 0 : index
      %12 = vector.load %arg7[%c0_10, %c0_11] : memref<8x64xf32, #tpu.memory_space<vmem>>, vector<8x64xf32>
      %c0_12 = arith.constant 0 : index
      %c0_13 = arith.constant 0 : index
      %13 = vector.load %arg4[%c0_12, %c0_13] : memref<1x64xf32, #tpu.memory_space<vmem>>, vector<1x64xf32>
      %14 = vector.broadcast %13 : vector<1x64xf32> to vector<8x64xf32>
      %15 = arith.addf %12, %14 : vector<8x64xf32>
      %cst_14 = arith.constant dense<0.000000e+00> : vector<64xf32>
      %16 = vector.multi_reduction <add>, %15, %cst_14 [0] : vector<8x64xf32> to vector<64xf32>
      %17 = vector.shape_cast %16 : vector<64xf32> to vector<1x64xf32>
      %18 = arith.mulf %15, %15 : vector<8x64xf32>
      %cst_15 = arith.constant dense<0.000000e+00> : vector<64xf32>
      %19 = vector.multi_reduction <add>, %18, %cst_15 [0] : vector<8x64xf32> to vector<64xf32>
      %20 = vector.shape_cast %19 : vector<64xf32> to vector<1x64xf32>
      %cst_16 = arith.constant 1.250000e-01 : f32
      %21 = vector.broadcast %cst_16 : f32 to vector<1x64xf32>
      %22 = arith.mulf %17, %21 : vector<1x64xf32>
      %cst_17 = arith.constant 1.250000e-01 : f32
      %23 = vector.broadcast %cst_17 : f32 to vector<1x64xf32>
      %24 = arith.mulf %20, %23 : vector<1x64xf32>
      %25 = arith.mulf %22, %22 : vector<1x64xf32>
      %26 = arith.subf %24, %25 : vector<1x64xf32>
      %c0_18 = arith.constant 0 : index
      %c0_19 = arith.constant 0 : index
      %27 = vector.load %arg5[%c0_18, %c0_19] : memref<1x64xf32, #tpu.memory_space<vmem>>, vector<1x64xf32>
      %cst_20 = arith.constant 9.99999974E-6 : f32
      %28 = vector.broadcast %cst_20 : f32 to vector<1x64xf32>
      %29 = arith.addf %26, %28 : vector<1x64xf32>
      %30 = math.rsqrt %29 : vector<1x64xf32>
      %31 = arith.mulf %27, %30 : vector<1x64xf32>
      %c0_21 = arith.constant 0 : index
      %c0_22 = arith.constant 0 : index
      %32 = vector.load %arg6[%c0_21, %c0_22] : memref<1x64xf32, #tpu.memory_space<vmem>>, vector<1x64xf32>
      %33 = arith.mulf %22, %31 : vector<1x64xf32>
      %34 = arith.subf %32, %33 : vector<1x64xf32>
      %35 = vector.broadcast %31 : vector<1x64xf32> to vector<8x64xf32>
      %36 = arith.mulf %15, %35 : vector<8x64xf32>
      %37 = vector.broadcast %34 : vector<1x64xf32> to vector<8x64xf32>
      %38 = arith.addf %36, %37 : vector<8x64xf32>
      %cst_23 = arith.constant 0.000000e+00 : f32
      %39 = vector.broadcast %cst_23 : f32 to vector<8x64xf32>
      %40 = arith.maximumf %38, %39 : vector<8x64xf32>
      %c0_24 = arith.constant 0 : index
      %c0_25 = arith.constant 0 : index
      %41 = vector.load %arg7[%c0_24, %c0_25] : memref<8x64xf32, #tpu.memory_space<vmem>>, vector<8x64xf32>
      tpu.vector_store %arg7[%c0_24, %c0_25], %40 {strides = array<i32>} : memref<8x64xf32, #tpu.memory_space<vmem>>, vector<8x64xf32>,
    } else {
    }
    return
  }
  func.func @transform_0(%arg0: i32, %arg1: i32) -> (i32, i32) {
    %c0_i32 = arith.constant 0 : i32
    %c0_i32_0 = arith.constant 0 : i32
    return %c0_i32, %arg1 : i32, i32
  }
  func.func @transform_1(%arg0: i32, %arg1: i32) -> (i32, i32) {
    %c0_i32 = arith.constant 0 : i32
    return %arg1, %arg0 : i32, i32
  }
  func.func @transform_2(%arg0: i32, %arg1: i32) -> (i32, i32) {
    %c0_i32 = arith.constant 0 : i32
    %c0_i32_0 = arith.constant 0 : i32
    return %c0_i32, %arg0 : i32, i32
  }
  func.func @transform_3(%arg0: i32, %arg1: i32) -> (i32, i32) {
    %c0_i32 = arith.constant 0 : i32
    %c0_i32_0 = arith.constant 0 : i32
    return %c0_i32, %arg0 : i32, i32
  }
  func.func @transform_4(%arg0: i32, %arg1: i32) -> (i32, i32) {
    %c0_i32 = arith.constant 0 : i32
    %c0_i32_0 = arith.constant 0 : i32
    return %c0_i32, %arg0 : i32, i32
  }
  func.func @transform_5(%arg0: i32, %arg1: i32) -> (i32, i32) {
    %c0_i32 = arith.constant 0 : i32
    %c0_i32_0 = arith.constant 0 : i32
    return %c0_i32, %arg0 : i32, i32
  }
}

</mosaic_0001>

<bundles_post_ra>
// kernel: fc_block.1
= control target key start
LH: loop header
LB: loop body
LE: loop exit
PB: predicated region body
PF: predicated region fallthrough
CT: control target
= control target key end

     0   :  { %10 = vsyncpa [#allocation3], 0  ;;  %s359_s0 = inlined_call_operand.hbm [shape: f32[8,32], index: 0, kind: input, shape index: {}]   ;;  %s360_s1 = inlined_call_operand.hbm [shape: f32[32,64], index: 1, kind: input, shape index: {}]   ;;  %s361_s2 = inlined_call_operand.vmem [shape: f32[1,64], index: 2, kind: input, shape index: {}]   ;;  %s362_s3 = inlined_call_operand.vmem [shape: f32[1,64], index: 3, kind: input, shape index: {}]   ;;  %s363_s4 = inlined_call_operand.vmem [shape: f32[1,64], index: 4, kind: input, shape index: {}]   ;;  %s364_s5 = inlined_call_operand.hbm [shape: f32[8,64], index: 5, kind: output, shape index: {}]  }
   0x1   :  { %11 = vsyncpa [#allocation6], 0 }
   0x2   :  { %12 = vsyncpa [#allocation4], 0  ;;  %s299_s18 = smov [#allocation2]   ;;  %s300_s20 = smov [#allocation5]  }
   0x3   :  { %s19_s19 = sshll.u32 %s299_s18, 4  ;;  %s28_s21 = sshll.u32 %s300_s20, 4  ;;  %s20_s19 = int_to_ptr.vmem [resolvable:$true] %s19_s19  ;;  %s29_s21 = int_to_ptr.vmem [resolvable:$true] %s28_s21 }
   0x4   :  { %s241_s22 = scalar_lea.vmem %s20_s19, 128  ;;  %p246_p1 = scmp.lt.s32.totalorder %s20_s19, %s20_s19 }
   0x5   :  { %p242_p0 = scmp.ne.s32.totalorder %s20_s19, %s241_s22  ;;  %p247_p2 = scmp.lt.s32.totalorder %s241_s22, %s241_s22 }
   0x7   :  { %p248_p3 = por %p247_p2, %p246_p1 }
   0x9   :  { %p249_p4 = pnand %p248_p3, %p242_p0 }
   0xb   :  { %252 = shalt.err (!%p249_p4)
}
   0xc   :  { %22 = dma.hbm_to_vmem [thread:$0]  %s359_s0, 128, %s20_s19, [#allocation3]  }
   0xd   :  { %s261_s25 = scalar_lea.vmem %s29_s21, 512  ;;  %p266_p6 = scmp.lt.s32.totalorder %s29_s21, %s29_s21 }
   0xe   :  { %p262_p5 = scmp.ne.s32.totalorder %s29_s21, %s261_s25  ;;  %p267_p7 = scmp.lt.s32.totalorder %s261_s25, %s261_s25 }
  0x10   :  { %p268_p8 = por %p267_p7, %p266_p6 }
  0x12   :  { %p269_p9 = pnand %p268_p8, %p262_p5 }
  0x14   :  { %272 = shalt.err (!%p269_p9)
}
  0x15   :  { %s301_s26 = smov 128   ;;  %s302_s27 = smov 8  }
  0x16   :  { %34 = dma.hbm_to_vmem [thread:$0]  %s360_s1, 512, %s29_s21, [#allocation6], %s301_s26, %s301_s26, %s302_s27  }
  0x17   :  { %293 = dma.done.wait [#allocation3], 128  }
  0x18   :  { %294 = vsyncadd [#allocation3], 4294967168 }
  0x19   :  { %295 = dma.done.wait [#allocation6], 512  }
  0x1a   :  { %296 = vsyncadd [#allocation6], 4294966784  ;;  %vm51_vm0 = vcmask 523264   ;;  %v303_v0 = vmov 0.0   ;;  %vm304_vm1 = vmmov 0   ;;  %v58_v1 = vld [vmem:[#allocation5 + $0x18] sm:$0xff]  ;;  %v175_v33 = vlaneseq }
  0x1b   :  { %213 = vmatprep.subr.mxu0 %v303_v0  ;;  %221 = vmatprep.mubr.msk.f32.mxu0 %vm304_vm1, %v303_v0  ;;  %52 = vst.msk [vmem:[#allocation7] sm:$0xff] %vm51_vm0, %v303_v0  ;;  %v57_v2 = vld [vmem:[#allocation5 + $0x10] sm:$0xff]  ;;  %v56_v3 = vld [vmem:[#allocation5 + $0x8] sm:$0xff]  ;;  %v55_v4 = vld [vmem:[#allocation5] sm:$0xff]  ;;  %vm59_vm2 = vcmask 261120   ;;  %s305_s8 = smov [#allocation7]  }
  0x1c   :  { %214 = vmatpush3.msra.mxu0 %v58_v1  ;;  %v54_v5 = vld [vmem:[#allocation2] sm:$0xff]  ;;  %v176_v34 = vshrl.u32 %v175_v33, 7  ;;  %s196_s9 = sshll.u32 %s305_s8, 4  ;;  %s197_s9 = int_to_ptr.vmem [resolvable:$true] %s196_s9 }
  0x1d   :  { %215 = vmatprep.subr.mxu0 %v303_v0  ;;  %v207_v10 = vld [vmem:[%s361_s2] ss:$0 sm:$0xff]  ;;  %p278_p11 = scmp.lt.s32.totalorder %s197_s9, %s197_s9 }
  0x1e   :  { %216 = vmatpush3.msra.mxu0 %v57_v2  ;;  %v167_v35 = vld [vmem:[%s362_s3] sm:$0x1]  ;;  %v177_v36 = vsub.s32 0, %v176_v34  ;;  %s273_s3 = scalar_lea.vmem %s197_s9, 128 }
  0x1f   :  { %217 = vmatprep.subr.mxu0 %v303_v0  ;;  %v171_v39 = vld [vmem:[%s363_s4] sm:$0x1]  ;;  %p274_p10 = scmp.ne.s32.totalorder %s197_s9, %s273_s3  ;;  %p279_p12 = scmp.lt.s32.totalorder %s273_s3, %s273_s3 }
  0x20   :  { %218 = vmatpush3.msra.mxu0 %v56_v3 }
  0x21   :  { %219 = vmatprep.subr.mxu0 %v303_v0  ;;  %p280_p13 = por %p279_p12, %p278_p11 }
  0x22   :  { %220 = vmatpush3.msra.mxu0 %v55_v4  ;;  %v53_v6 = vld [vmem:[#allocation7] sm:$0xff] }
  0x23   :  { %222 = vmatmul.mubr.msk.f32.vlgmr.msra.gmra.mxu0 %vm59_vm2, %v54_v5  ;;  %p281_p0 = pnand %p280_p13, %p274_p10 }
  0xe3   :  { %v129_v7 = vpop.f32.mrf.mxu0 }
  0xe4   :  { %v133_v8 = vadd.f32 %v129_v7, %v53_v6 }
  0xe5   :  { %v223_v9 = vpop.f32.mrf.mxu0 }
  0xe6   :  { %135 = vst.msk [vmem:[#allocation7] sm:$0xff] %vm51_vm0, %v133_v8 }
  0xed   :  { %v139_v11 = vld [vmem:[#allocation7] sm:$0xff] }
  0xee   :  { %v147_v12 = vadd.f32 %v207_v10, %v139_v11 }
  0xf0   :  { %v148_v13 = vsel %vm51_vm0, %v147_v12, 0.0  ;;  %v155_v14 = vmul.f32 %v147_v12, %v147_v12 }
  0xf1   :  { %v149_v15 = vrot.slane %v148_v13, 4 }
  0xf2   :  { %v156_v16 = vsel %vm51_vm0, %v155_v14, 0.0 }
  0xf3   :  { %v150_v17 = vadd.f32 %v149_v15, %v148_v13  ;;  %v157_v18 = vrot.slane %v156_v16, 4 }
  0xf5   :  { %v151_v19 = vrot.slane %v150_v17, 2  ;;  %v158_v20 = vadd.f32 %v157_v18, %v156_v16 }
  0xf7   :  { %v152_v21 = vadd.f32 %v151_v19, %v150_v17  ;;  %v159_v22 = vrot.slane %v158_v20, 2 }
  0xf9   :  { %v153_v23 = vrot.slane %v152_v21, 1  ;;  %v160_v24 = vadd.f32 %v159_v22, %v158_v20 }
  0xfb   :  { %v154_v25 = vadd.f32 %v153_v23, %v152_v21  ;;  %v161_v26 = vrot.slane %v160_v24, 1 }
  0xfd   :  { %v162_v27 = vadd.f32 %v161_v26, %v160_v24  ;;  %v163_v28 = vmul.f32 0.125, %v154_v25 }
  0xff   :  { %v164_v29 = vmul.f32 0.125, %v162_v27  ;;  %v165_v30 = vmul.f32 %v163_v28, %v163_v28 }
 0x101   :  { %v166_v31 = vsub.f32 %v164_v29, %v165_v30 }
 0x103   :  { %v168_v32 = vadd.f32 1e-05, %v166_v31 }
 0x105   :  { %231 = vrsqrt.f32 %v168_v32 }
 0x112   :  { %v232_v37 = vpop.eup %231 }
 0x113   :  { %v170_v38 = vmul.f32 %v232_v37, %v167_v35 }
 0x115   :  { %v172_v40 = vmul.f32 %v170_v38, %v163_v28  ;;  %v178_v41 = vrot.slane %v170_v38, %v177_v36 }
 0x117   :  { %v173_v42 = vsub.f32 %v171_v39, %v172_v40  ;;  %v180_v43 = vmul.f32 %v178_v41, %v147_v12 }
 0x119   :  { %v185_v44 = vrot.slane %v173_v42, %v177_v36 }
 0x11b   :  { %v187_v45 = vadd.f32 %v185_v44, %v180_v43 }
 0x11d   :  { %v188_v46 = vmax.f32 %v187_v45, 0.0 }
 0x11f   :  { %189 = vst.msk [vmem:[#allocation7] sm:$0xff] %vm51_vm0, %v188_v46 }
 0x120   :  { %284 = shalt.err (!%p281_p0)
}
 0x121   :  { %199 = dma.vmem_to_hbm [thread:$0]  %s197_s9, 128, %s364_s5, [#allocation4]  }
 0x122   :  { %297 = dma.done.wait [#allocation4], 128  }
 0x123   :  { %298 = vsyncadd [#allocation4], 4294967168 }
 0x124   :  { %203 = vsyncpa [#allocation3], 1 }
 0x125   :  { %204 = vsyncpa [#allocation6], 1 }
 0x126   :  { %205 = vsyncpa [#allocation4], 1 }

</bundles_post_ra>
